<compile_context>
chip_gen: v7x
topology: tpu7x:2x2x1
jax: 0.10.0
libtpu: 0.0.40
codegen_flags: <defaults>
</compile_context>

<pallas_src>
import jax
import jax.numpy as jnp
from jax.experimental import pallas as pl
from jax.experimental.pallas import tpu as pltpu

NEG_SLOPE = 0.01   # torch.nn.LeakyReLU default negative_slope
LANE = 128         # TPU lane width
SUBLANE = 8        # TPU sublane width


def _net_kernel(x_ref, w1_ref, b1_ref, w2_ref, b2_ref, o_ref):
    x = x_ref[...]
    w1 = w1_ref[...]
    # Match matmul operand dtype to the (possibly bf16) prepared weights.
    h = jnp.dot(x.astype(w1.dtype), w1, preferred_element_type=jnp.float32)
    h = h + b1_ref[...]                       # f32 bias add (lane-dense, H padded to 128)
    h = jnp.maximum(h, NEG_SLOPE * h)         # LeakyReLU: single VALU max
    w2 = w2_ref[...]
    z = jnp.dot(h.astype(w2.dtype), w2, preferred_element_type=jnp.float32)
    o_ref[...] = (z + b2_ref[...]).astype(o_ref.dtype)


def prepare_params(w_hidden, b_hidden, w_predict, b_predict,
                   *, matmul_dtype=jnp.float32):
    """One-time weight layout prep (transpose + hidden-dim lane-pad).

    w_hidden:  [n_hidden, n_feature]  (PyTorch layout)
    b_hidden:  [n_hidden]
    w_predict: [n_output, n_hidden]
    b_predict: [n_output]

    Returns ((w1, b1, w2, b2), n_output) with
      w1: [n_feature, h_pad]   (matmul_dtype; hidden cols zero-padded to 128)
      b1: [1, h_pad]           (f32, zero-padded)
      w2: [h_pad, n_output]    (matmul_dtype; padded hidden rows are zero)
      b2: [1, n_output]        (f32)
    Padded hidden units compute h=0 -> LeakyReLU(0)=0 and multiply zero W2
    rows, so the result is exactly the unpadded computation.
    """
    n_hidden, n_feature = w_hidden.shape
    n_output = w_predict.shape[0]
    h_pad = ((n_hidden + LANE - 1) // LANE) * LANE

    w1 = jnp.zeros((n_feature, h_pad), matmul_dtype)
    w1 = w1.at[:, :n_hidden].set(jnp.asarray(w_hidden.T, matmul_dtype))
    b1 = jnp.zeros((1, h_pad), jnp.float32)
    b1 = b1.at[0, :n_hidden].set(jnp.asarray(b_hidden, jnp.float32))

    w2 = jnp.zeros((h_pad, n_output), matmul_dtype)
    w2 = w2.at[:n_hidden, :].set(jnp.asarray(w_predict.T, matmul_dtype))
    b2 = jnp.asarray(b_predict, jnp.float32).reshape(1, n_output)
    return (w1, b1, w2, b2), n_output


def _choose_bm(B, block_m):
    """Pick the batch tile size.

    * B <= 8: one full-array tile (can't split below a sublane).
    * 8 < B <= block_m: split into >= 2 sublane-aligned tiles so both v7x
      TensorCores get work (no effect on v5e/v6e, harmless overhead-wise).
    * B > block_m: large tiles (block_m) to amortize per-grid-step overhead.
    The last tile may be ragged; Pallas drops its out-of-bounds writes.
    """
    if B <= SUBLANE:
        return B
    if B <= block_m:
        bm = ((pl.cdiv(B, 2) + SUBLANE - 1) // SUBLANE) * SUBLANE
        return bm
    return block_m


def net_forward(x, params, n_output, *, block_m=1024):
    """x: [B, n_feature] f32; params from prepare_params(). Returns [B, n_output] f32."""
    w1, b1, w2, b2 = params
    B, n_feature = x.shape
    h_pad = w1.shape[1]

    bm = _choose_bm(B, block_m)
    grid = (pl.cdiv(B, bm),)

    # Advisory cost hint for XLA's scheduler (cheap, helps overlap elsewhere).
    flops = 2 * B * (n_feature * h_pad + h_pad * n_output)
    bytes_accessed = (
        x.size * x.dtype.itemsize
        + B * n_output * 4
        + sum(int(p.size) * p.dtype.itemsize for p in params)
    )

    out = pl.pallas_call(
        _net_kernel,
        out_shape=jax.ShapeDtypeStruct((B, n_output), jnp.float32),
        grid=grid,
        in_specs=[
            # x batch tile; last dim == full n_feature (no lane padding on x).
            pl.BlockSpec((bm, n_feature), lambda i: (i, 0)),
            # Weights / biases: constant index_map -> resident across tiles.
            pl.BlockSpec((n_feature, h_pad), lambda i: (0, 0)),   # W1
            pl.BlockSpec((1, h_pad), lambda i: (0, 0)),           # b1
            pl.BlockSpec((h_pad, n_output), lambda i: (0, 0)),    # W2
            pl.BlockSpec((1, n_output), lambda i: (0, 0)),        # b2
        ],
        # Unpadded output: block last-dim equals the full array dim (legal);
        # narrow masked stores cost far less than 16x HBM writeback + a slice.
        out_specs=pl.BlockSpec((bm, n_output), lambda i: (i, 0)),
        compiler_params=pltpu.CompilerParams(
            dimension_semantics=("parallel",)),
        cost_estimate=pl.CostEstimate(
            flops=flops, transcendentals=0, bytes_accessed=bytes_accessed),
    )(x, w1, b1, w2, b2)
    return out


def init_params(key, n_feature, n_hidden, n_output):
    """Deterministic PyTorch-Linear-style init (uniform(-1/sqrt(fan_in), +))."""
    ks = jax.random.split(key, 6)

    def linear_init(kw, kb, fan_in, fan_out):
        bound = 1.0 / jnp.sqrt(jnp.float32(fan_in))
        w = jax.random.uniform(kw, (fan_out, fan_in), jnp.float32, -bound, bound)
        b = jax.random.uniform(kb, (fan_out,), jnp.float32, -bound, bound)
        return w, b

    w_hidden, b_hidden = linear_init(ks[0], ks[1], n_feature, n_hidden)
    # hidden1 layer exists in __init__ but is unused in forward(); created
    # only for parity with the module definition.
    _w_hidden1, _b_hidden1 = linear_init(ks[2], ks[3], n_hidden, 100)
    w_predict, b_predict = linear_init(ks[4], ks[5], n_hidden, n_output)
    return w_hidden, b_hidden, w_predict, b_predict


if __name__ == "__main__":
    n_feature, n_hidden, n_output = 32, 64, 8
    batch = 16

    key = jax.random.PRNGKey(0)
    kx, kp = jax.random.split(key)
    x = jax.random.normal(kx, (batch, n_feature), jnp.float32)
    w_hidden, b_hidden, w_predict, b_predict = init_params(
        kp, n_feature, n_hidden, n_output)

    # One-time layout prep (transpose + hidden-dim pad), outside the per-call
    # path.  Keep f32 here: bf16 weights only help if x is bf16 upstream.
    params, n_out = prepare_params(w_hidden, b_hidden, w_predict, b_predict,
                                   matmul_dtype=jnp.float32)

    z = net_forward(x, params, n_out)
    jax.block_until_ready(z)

    # Correctness check against pure-JAX reference (f32).
    h_ref = x @ w_hidden.T + b_hidden
    h_ref = jnp.where(h_ref > 0, h_ref, NEG_SLOPE * h_ref)
    z_ref = h_ref @ w_predict.T + b_predict
    assert z.shape == (batch, n_output)
    assert jnp.allclose(z, z_ref, atol=1e-5, rtol=1e-5)

    print("KERNEL_OK")
</pallas_src>

<mosaic_0001>
module attributes {stable_mosaic.version = 11 : i64} {
  func.func @_net_kernel(%arg0: i32, %arg1: memref<8x32xf32, #tpu.memory_space<vmem>>, %arg2: memref<32x128xf32, #tpu.memory_space<vmem>>, %arg3: memref<1x128xf32, #tpu.memory_space<vmem>>, %arg4: memref<128x8xf32, #tpu.memory_space<vmem>>, %arg5: memref<1x8xf32, #tpu.memory_space<vmem>>, %arg6: memref<8x8xf32, #tpu.memory_space<vmem>>) attributes {dimension_semantics = [#tpu.dimension_semantics<parallel>], iteration_bounds = array<i64: 2>, scalar_prefetch = 0 : i64, scratch_operands = 0 : i64, tpu.core_type = #tpu.core_type<tc>, window_params = [{transform_indices = @transform_0, window_bounds = array<i64: 8, 32>}, {pipeline_mode = #tpu.pipeline_mode<synchronous>, transform_indices = @transform_1, window_bounds = array<i64: 32, 128>}, {pipeline_mode = #tpu.pipeline_mode<synchronous>, transform_indices = @transform_2, window_bounds = array<i64: 1, 128>}, {pipeline_mode = #tpu.pipeline_mode<synchronous>, transform_indices = @transform_3, window_bounds = array<i64: 128, 8>}, {pipeline_mode = #tpu.pipeline_mode<synchronous>, transform_indices = @transform_4, window_bounds = array<i64: 1, 8>}, {transform_indices = @transform_5, window_bounds = array<i64: 8, 8>}]} {
    %c0 = arith.constant 0 : index
    %c0_0 = arith.constant 0 : index
    %0 = vector.load %arg1[%c0, %c0_0] : memref<8x32xf32, #tpu.memory_space<vmem>>, vector<8x32xf32>
    %c0_1 = arith.constant 0 : index
    %c0_2 = arith.constant 0 : index
    %1 = vector.load %arg2[%c0_1, %c0_2] : memref<32x128xf32, #tpu.memory_space<vmem>>, vector<32x128xf32>
    %cst = arith.constant dense<0.000000e+00> : vector<8x128xf32>
    %2 = tpu.matmul %0, %1, %cst {dimension_numbers = #tpu.dot_dimension_numbers<[1], [0], [0], [1], [0, 0, 1, 1], [], []>} : vector<8x32xf32>, vector<32x128xf32>, vector<8x128xf32> -> vector<8x128xf32>
    %c0_3 = arith.constant 0 : index
    %c0_4 = arith.constant 0 : index
    %3 = vector.load %arg3[%c0_3, %c0_4] : memref<1x128xf32, #tpu.memory_space<vmem>>, vector<1x128xf32>
    %4 = vector.broadcast %3 : vector<1x128xf32> to vector<8x128xf32>
    %5 = arith.addf %2, %4 : vector<8x128xf32>
    %cst_5 = arith.constant 0.00999999977 : f32
    %6 = vector.broadcast %cst_5 : f32 to vector<8x128xf32>
    %7 = arith.mulf %6, %5 : vector<8x128xf32>
    %8 = arith.maximumf %5, %7 : vector<8x128xf32>
    %c0_6 = arith.constant 0 : index
    %c0_7 = arith.constant 0 : index
    %9 = vector.load %arg4[%c0_6, %c0_7] : memref<128x8xf32, #tpu.memory_space<vmem>>, vector<128x8xf32>
    %cst_8 = arith.constant dense<0.000000e+00> : vector<8x8xf32>
    %10 = tpu.matmul %8, %9, %cst_8 {dimension_numbers = #tpu.dot_dimension_numbers<[1], [0], [0], [1], [0, 0, 1, 1], [], []>} : vector<8x128xf32>, vector<128x8xf32>, vector<8x8xf32> -> vector<8x8xf32>
    %c0_9 = arith.constant 0 : index
    %c0_10 = arith.constant 0 : index
    %11 = vector.load %arg5[%c0_9, %c0_10] : memref<1x8xf32, #tpu.memory_space<vmem>>, vector<1x8xf32>
    %12 = vector.broadcast %11 : vector<1x8xf32> to vector<8x8xf32>
    %13 = arith.addf %10, %12 : vector<8x8xf32>
    %c0_11 = arith.constant 0 : index
    %c0_12 = arith.constant 0 : index
    %14 = vector.load %arg6[%c0_11, %c0_12] : memref<8x8xf32, #tpu.memory_space<vmem>>, vector<8x8xf32>
    tpu.vector_store %arg6[%c0_11, %c0_12], %13 {strides = array<i32>} : memref<8x8xf32, #tpu.memory_space<vmem>>, vector<8x8xf32>,
    return
  }
  func.func @transform_0(%arg0: i32) -> (i32, i32) {
    %c0_i32 = arith.constant 0 : i32
    %c0_i32_0 = arith.constant 0 : i32
    return %arg0, %c0_i32 : i32, i32
  }
  func.func @transform_1(%arg0: i32) -> (i32, i32) {
    %c0_i32 = arith.constant 0 : i32
    %c0_i32_0 = arith.constant 0 : i32
    %c0_i32_1 = arith.constant 0 : i32
    return %c0_i32, %c0_i32_0 : i32, i32
  }
  func.func @transform_2(%arg0: i32) -> (i32, i32) {
    %c0_i32 = arith.constant 0 : i32
    %c0_i32_0 = arith.constant 0 : i32
    %c0_i32_1 = arith.constant 0 : i32
    return %c0_i32, %c0_i32_0 : i32, i32
  }
  func.func @transform_3(%arg0: i32) -> (i32, i32) {
    %c0_i32 = arith.constant 0 : i32
    %c0_i32_0 = arith.constant 0 : i32
    %c0_i32_1 = arith.constant 0 : i32
    return %c0_i32, %c0_i32_0 : i32, i32
  }
  func.func @transform_4(%arg0: i32) -> (i32, i32) {
    %c0_i32 = arith.constant 0 : i32
    %c0_i32_0 = arith.constant 0 : i32
    %c0_i32_1 = arith.constant 0 : i32
    return %c0_i32, %c0_i32_0 : i32, i32
  }
  func.func @transform_5(%arg0: i32) -> (i32, i32) {
    %c0_i32 = arith.constant 0 : i32
    %c0_i32_0 = arith.constant 0 : i32
    return %arg0, %c0_i32 : i32, i32
  }
}

</mosaic_0001>

<bundles_post_ra>
// kernel: tpu_custom_call.1
= control target key start
LH: loop header
LB: loop body
LE: loop exit
PB: predicated region body
PF: predicated region fallthrough
CT: control target
= control target key end

     0   :  { %s618_s18 = smov 0   ;;  %s708_s0 = inlined_call_operand.vmem [shape: f32[16,32], index: 0, kind: input, shape index: {}]   ;;  %s709_s1 = inlined_call_operand.vmem [shape: f32[32,128], index: 1, kind: input, shape index: {}]   ;;  %s710_s2 = inlined_call_operand.vmem [shape: f32[1,128], index: 2, kind: input, shape index: {}]   ;;  %s711_s3 = inlined_call_operand.vmem [shape: f32[128,8], index: 3, kind: input, shape index: {}]   ;;  %s712_s4 = inlined_call_operand.vmem [shape: f32[1,8], index: 4, kind: input, shape index: {}]   ;;  %s713_s5 = inlined_call_operand.vmem [shape: f32[16,8], index: 5, kind: output, shape index: {}]  }
   0x1 LB: > { %s456_s19 = sadd.s32 4294967295, %s583_s18   ;;  %p460_p0 = scmp.ge.s32.totalorder %s583_s18, 1  ;;  %s583_s18 = sphi %s618_s18, %s15_s18  }
   0x2   : > { %p186_p1 = scmp.lt.s32.totalorder %s583_s18, 3 }
   0x4   : > { %p187_p2 = pnand %p460_p0, %p186_p1 }
   0x5   : > { %v221_v0 = vld [vmem:[%s709_s1] sm:$0xff] (!%p187_p2)  ;;  %v222_v1 = vld [vmem:[%s709_s1 + $0x8] sm:$0xff] (!%p187_p2)  ;;  %v223_v2 = vld [vmem:[%s709_s1 + $0x10] sm:$0xff] (!%p187_p2)  ;;  %v585_v3 = vmov (!%p187_p2), 0.0|0.0   ;;  %vm586_vm0 = vmmov (!%p187_p2), 0   ;;  %v587_v6 = vmov (!%p187_p2), 0.0  }
   0x6   : > { %190 = sbr.rel (%p187_p2) target bundleno = 450 (0x1c2), region = 40  ;;  %536 = vmatprep.subr.bf16.mxu0 (!%p187_p2), %v585_v3  ;;  %v537_v4 = vpack.c.bf16 (!%p187_p2), %v222_v1, %v221_v0  ;;  %v224_v5 = vld [vmem:[%s709_s1 + $0x18] sm:$0xff] (!%p187_p2)  ;;  %498 = vmatprep.mubr.msk.f32.mxu0 (!%p187_p2), %vm586_vm0, %v587_v6  ;;  %p212_p3 = scmp.lt.s32.totalorder (!%p187_p2), %s456_s19, 1  ;;  %v308_v7 = vld [vmem:[%s711_s3] sm:$0xff] (!%p187_p2)  ;;  %v309_v8 = vld [vmem:[%s711_s3 + $0x8] sm:$0xff] (!%p187_p2)  ;;  %vm232_vm1 = vcmask (!%p187_p2), 261120  }
   0x7   : > { %542 = vmatprep.subr.bf16.mxu1 (!%p187_p2), %v585_v3  ;;  %v543_v9 = vpack.c.bf16 (!%p187_p2), %v309_v8, %v308_v7  ;;  %v310_v10 = vld [vmem:[%s711_s3 + $0x10] sm:$0xff] (!%p187_p2)  ;;  %v311_v11 = vld [vmem:[%s711_s3 + $0x18] sm:$0xff] (!%p187_p2)  ;;  %533 = vmatprep.mubr.msk.f32.mxu1 (!%p187_p2), %vm586_vm0, %v587_v6  ;;  %v540_v12 = vpack.c.bf16 (!%p187_p2), %v224_v5, %v223_v2  ;;  %v312_v14 = vld [vmem:[%s711_s3 + $0x20] sm:$0xff] (!%p187_p2)  ;;  %vm401_vm2 = vcmask (!%p187_p2), 64512  }
   0x8   : > { %538 = vmatpush3.bf16.msra.mxu0 (!%p187_p2), %v537_v4  ;;  %v546_v13 = vpack.c.bf16 (!%p187_p2), %v311_v11, %v310_v10  ;;  %v313_v15 = vld [vmem:[%s711_s3 + $0x28] sm:$0xff] (!%p187_p2)  ;;  %v314_v18 = vld [vmem:[%s711_s3 + $0x30] sm:$0xff] (!%p187_p2)  ;;  %v315_v19 = vld [vmem:[%s711_s3 + $0x38] sm:$0xff] (!%p187_p2) }
   0x9   : > { %539 = vmatprep.subr.bf16.mxu0 (!%p187_p2), %v585_v3  ;;  %544 = vmatpush3.bf16.msra.mxu1 (!%p187_p2), %v543_v9  ;;  %v549_v17 = vpack.c.bf16 (!%p187_p2), %v313_v15, %v312_v14  ;;  %v552_v20 = vpack.c.bf16 (!%p187_p2), %v315_v19, %v314_v18  ;;  %v316_v21 = vld [vmem:[%s711_s3 + $0x40] sm:$0xff] (!%p187_p2)  ;;  %v317_v22 = vld [vmem:[%s711_s3 + $0x48] sm:$0xff] (!%p187_p2)  ;;  %v318_v24 = vld [vmem:[%s711_s3 + $0x50] sm:$0xff] (!%p187_p2) }
   0xa   : > { %545 = vmatprep.subr.bf16.mxu1 (!%p187_p2), %v585_v3  ;;  %v555_v23 = vpack.c.bf16 (!%p187_p2), %v317_v22, %v316_v21  ;;  %v319_v25 = vld [vmem:[%s711_s3 + $0x58] sm:$0xff] (!%p187_p2)  ;;  %v320_v27 = vld [vmem:[%s711_s3 + $0x60] sm:$0xff] (!%p187_p2)  ;;  %v321_v28 = vld [vmem:[%s711_s3 + $0x68] sm:$0xff] (!%p187_p2) }
   0xb   : > { %v558_v26 = vpack.c.bf16 (!%p187_p2), %v319_v25, %v318_v24  ;;  %v561_v29 = vpack.c.bf16 (!%p187_p2), %v321_v28, %v320_v27  ;;  %v322_v30 = vld [vmem:[%s711_s3 + $0x70] sm:$0xff] (!%p187_p2)  ;;  %v323_v31 = vld [vmem:[%s711_s3 + $0x78] sm:$0xff] (!%p187_p2)  ;;  %v463_v33 = vld [vmem:[%s710_s2] ss:$0 sm:$0xff] (!%p187_p2) }
   0xc   : > { %541 = vmatpush3.bf16.msra.mxu0 (!%p187_p2), %v540_v12  ;;  %v564_v32 = vpack.c.bf16 (!%p187_p2), %v323_v31, %v322_v30  ;;  %v465_v39 = vld [vmem:[%s712_s4] ss:$0 sm:$0xff] (!%p187_p2) }
   0xd   : > { %s715_s19 = smov (!%p212_p3, %s456_s19), 1  ;;  %547 = vmatpush3.bf16.msra.mxu1 %v546_v13 }
   0xe   : > { %s461_s11 = sshll.u32 %s715_s19, 3  ;;  %548 = vmatprep.subr.bf16.mxu1 %v585_v3 }
   0xf   : > { %s215_s20 = scalar_lea.vmem %s708_s0, %s461_s11  ;;  %s219_s25 = scalar_lea.vmem %s713_s5, %s461_s11 }
  0x10   : > { %v220_v16 = vld [vmem:[%s215_s20] sm:$0xff] }
  0x11   : > { %499 = vmatmul.mubr.msk.f32.vlgmr.msra.gmra.mrb[0].mxu0 %vm232_vm1, %v220_v16  ;;  %550 = vmatpush3.bf16.msra.mxu1 %v549_v17 }
  0x12   : > { %551 = vmatprep.subr.bf16.mxu1 %v585_v3 }
  0x15   : > { %553 = vmatpush3.bf16.msra.mxu1 %v552_v20 }
  0x16   : > { %554 = vmatprep.subr.bf16.mxu1 %v585_v3 }
  0x19   : > { %556 = vmatpush3.bf16.msra.mxu1 %v555_v23 }
  0x1a   : > { %557 = vmatprep.subr.bf16.mxu1 %v585_v3 }
  0x1d   : > { %559 = vmatpush3.bf16.msra.mxu1 %v558_v26 }
  0x1e   : > { %560 = vmatprep.subr.bf16.mxu1 %v585_v3 }
  0x21   : > { %562 = vmatpush3.bf16.msra.mxu1 %v561_v29 }
  0x22   : > { %563 = vmatprep.subr.bf16.mxu1 %v585_v3 }
  0x25   : > { %565 = vmatpush3.bf16.msra.mxu1 %v564_v32 }
  0xe4   : > { %v302_v34 = vpop.f32.mrb[0].mxu0 }
  0xe5   : > { %v303_v35 = vadd.f32 %v463_v33, %v302_v34  ;;  %v500_v36 = vpop.f32.mrb[1].mxu0 }
  0xe7   : > { %v306_v37 = vmul.f32 0.01, %v303_v35 }
  0xe9   : > { %v307_v38 = vmax.f32 %v303_v35, %v306_v37 }
  0xeb   : > { %534 = vmatmul.mubr.f32.vlgmr.msra.gmra.mrb[0].mxu1 %v307_v38 }
 0x1be   : > { %v397_v40 = vpop.f32.mrb[0].mxu1 }
 0x1bf   : > { %v398_v41 = vadd.f32 %v465_v39, %v397_v40  ;;  %v535_v42 = vpop.f32.mrb[1].mxu1 }
 0x1c1   : > { %402 = vst.msk [vmem:[%s219_s25] sm:$0xff] %vm401_vm2, %v398_v41 }
 0x1c2 PF: > { %s15_s18 = sadd.s32 1, %s583_s18  }
 0x1c3   : > { %p12_p4 = scmp.ge.s32.totalorder %s15_s18, 4  }
 0x1c5   :  { %14 = sbr.rel (!%p12_p4) target bundleno = 1 (0x1), region = 70 }

</bundles_post_ra>
